<compile_context>
chip_gen: v5e
topology: v5e:2x2
jax: 0.10.0
libtpu: 0.0.40
codegen_flags: <defaults>
</compile_context>

<pallas_src>
import math
import numpy as np
import jax
import jax.numpy as jnp
from jax import lax
from jax.experimental import pallas as pl
from jax.experimental.pallas import tpu as pltpu


LN_EPS = 1e-5          # nn.LayerNorm default
PERF_EPS = 1e-4        # softmax_kernel eps
DW_KERNEL = 31         # ConformerConvModule kernel_size
DW_PAD = DW_KERNEL // 2  # calc_same_padding(31) == (15, 15)


# ----------------------------------------------------------------------------
# in-kernel helpers
# ----------------------------------------------------------------------------

def _layernorm(x, g, b):
    mu = jnp.mean(x, axis=-1, keepdims=True)
    xc = x - mu
    var = jnp.mean(xc * xc, axis=-1, keepdims=True)
    return xc * lax.rsqrt(var + LN_EPS) * g + b


# ----------------------------------------------------------------------------
# Kernel 1: fused LayerNorm1 + QKV projection (row tiled)
# ----------------------------------------------------------------------------

def ln_qkv_kernel(x_ref, g_ref, b_ref, w_ref, bias_ref, o_ref):
    xn = _layernorm(x_ref[...], g_ref[...], b_ref[...])
    o_ref[...] = (jnp.dot(xn, w_ref[...], preferred_element_type=jnp.float32)
                  + bias_ref[...])


def _row_tile(m, target=256):
    """Largest multiple-of-8 divisor of m not exceeding target (else m)."""
    if m <= target:
        return m
    t = target - (target % 8)
    while t >= 8:
        if m % t == 0:
            return t
        t -= 8
    return m


def ln_qkv(x2d, g, b, w, bias):
    M, D = x2d.shape
    N3 = w.shape[1]
    tm = _row_tile(M)
    return pl.pallas_call(
        ln_qkv_kernel,
        out_shape=jax.ShapeDtypeStruct((M, N3), x2d.dtype),
        grid=(M // tm,),
        in_specs=[
            pl.BlockSpec((tm, D), lambda i: (i, 0)),
            pl.BlockSpec((1, D), lambda i: (0, 0)),
            pl.BlockSpec((1, D), lambda i: (0, 0)),
            pl.BlockSpec((D, N3), lambda i: (0, 0)),
            pl.BlockSpec((1, N3), lambda i: (0, 0)),
        ],
        out_specs=pl.BlockSpec((tm, N3), lambda i: (i, 0)),
        compiler_params=pltpu.CompilerParams(dimension_semantics=("parallel",)),
    )(x2d, g.reshape(1, D), b.reshape(1, D), w, bias.reshape(1, N3))


# ----------------------------------------------------------------------------
# Kernel 2: Performer attention + output projection + residual (per batch)
# ----------------------------------------------------------------------------

def make_attn_kernel(heads, dim_head, m_true):
    ratio = float(m_true) ** (-0.5)      # projection_matrix.shape[0] ** -0.5 (true M)
    dn = float(dim_head) ** (-0.25)      # data_normalizer

    def kernel(x_ref, qkv_ref, proj_ref, wo_ref, bo_ref, o_ref):
        x = x_ref[0]                     # (N, D)   residual stream
        qkv = qkv_ref[0]                 # (N, 3*H*Dh)
        proj = proj_ref[...]             # (Mpad, Dh), rows >= m_true are zero
        n = x.shape[0]
        d_model = x.shape[1]
        mpad = proj.shape[0]
        inner = heads * dim_head

        # mask for padded random-feature columns (exactness w.r.t. unpadded ref)
        col = lax.broadcasted_iota(jnp.int32, (n, mpad), 1)
        col_mask = col < m_true

        dims_id_jd = (((1,), (1,)), ((), ()))   # '...id,...jd->...ij'
        acc = jnp.zeros((n, d_model), jnp.float32)

        for h in range(heads):           # static unrolled head loop (no transposes)
            q = qkv[:, h * dim_head:(h + 1) * dim_head]
            k = qkv[:, inner + h * dim_head: inner + (h + 1) * dim_head]
            v = qkv[:, 2 * inner + h * dim_head: 2 * inner + (h + 1) * dim_head]

            # query feature map: max-subtracted, +eps outside exp
            dash_q = lax.dot_general(q * dn, proj, dims_id_jd,
                                     preferred_element_type=jnp.float32)
            diag_q = jnp.sum(q * q, axis=-1, keepdims=True) * (0.5 * dn * dn)
            qmax = jnp.max(jnp.where(col_mask, dash_q, -1e30),
                           axis=-1, keepdims=True)
            qp = ratio * (jnp.exp(dash_q - diag_q - qmax) + PERF_EPS)
            qp = jnp.where(col_mask, qp, 0.0)

            # key feature map: +eps inside exp, no max (matches reference)
            dash_k = lax.dot_general(k * dn, proj, dims_id_jd,
                                     preferred_element_type=jnp.float32)
            diag_k = jnp.sum(k * k, axis=-1, keepdims=True) * (0.5 * dn * dn)
            kp = ratio * jnp.exp(dash_k - diag_k + PERF_EPS)
            kp = jnp.where(col_mask, kp, 0.0)

            # non-causal linear attention
            k_cumsum = jnp.sum(kp, axis=0, keepdims=True)               # (1, Mpad)
            d_inv = pl.reciprocal(
                jnp.sum(qp * k_cumsum, axis=-1, keepdims=True), approx=True)
            context = lax.dot_general(kp, v, (((0,), (0,)), ((), ())),
                                      preferred_element_type=jnp.float32)  # (Mpad, Dh)
            out_h = jnp.dot(qp, context,
                            preferred_element_type=jnp.float32) * d_inv    # (N, Dh)

            # fused output projection: concat-over-heads @ Wo == sum_h out_h @ Wo_h
            wo_h = wo_ref[h * dim_head:(h + 1) * dim_head, :]
            acc = acc + jnp.dot(out_h, wo_h, preferred_element_type=jnp.float32)

        # TODO(synk): bf16 MXU casting (v5e/v6e) and KV-chunked grid for very long N
        # (v7x 64 MiB VMEM) are further options; full-N per program is fine here.
        o_ref[0] = x + acc + bo_ref[...]

    return kernel


def attention_block(x_bnd, qkv_bn3, proj_pad, wo, bo, heads, dim_head, m_true):
    B, N, D = x_bnd.shape
    three_inner = qkv_bn3.shape[-1]
    Mpad, Dh = proj_pad.shape
    kernel = make_attn_kernel(heads, dim_head, m_true)
    return pl.pallas_call(
        kernel,
        out_shape=jax.ShapeDtypeStruct((B, N, D), x_bnd.dtype),
        grid=(B,),
        in_specs=[
            pl.BlockSpec((1, N, D), lambda b: (b, 0, 0)),
            pl.BlockSpec((1, N, three_inner), lambda b: (b, 0, 0)),
            pl.BlockSpec((Mpad, Dh), lambda b: (0, 0)),
            pl.BlockSpec((heads * dim_head, D), lambda b: (0, 0)),
            pl.BlockSpec((1, D), lambda b: (0, 0)),
        ],
        out_specs=pl.BlockSpec((1, N, D), lambda b: (b, 0, 0)),
        compiler_params=pltpu.CompilerParams(dimension_semantics=("parallel",)),
    )(x_bnd, qkv_bn3, proj_pad, wo, bo.reshape(1, D))


# ----------------------------------------------------------------------------
# Kernel 3: fused Conformer conv branch + residual (per batch)
#   LN2 -> pointwise conv (concat GLU weights) -> GLU -> depthwise conv (in-VMEM
#   halo padding) -> Swish -> pointwise conv2 -> + residual
# ----------------------------------------------------------------------------

def make_conformer_kernel(n_seq, conf_inner, k_taps):
    pad_off = 16  # sublane-aligned placement of y inside the halo scratch

    def kernel(x_ref, g_ref, b_ref, wglu_ref, bglu_ref, dww_ref, dwb_ref,
               c2w_ref, c2b_ref, o_ref, pad_ref):
        x = x_ref[0]                                        # (N, D)
        xn = _layernorm(x, g_ref[...], b_ref[...])

        # pointwise Conv1d(dim -> 2*inner) with concatenated [out|gate] weights + GLU
        z = (jnp.dot(xn, wglu_ref[...], preferred_element_type=jnp.float32)
             + bglu_ref[...])                               # (N, 2*Ci) lane-dense
        a = z[:, :conf_inner]
        gate = z[:, conf_inner:]
        y = a * jax.nn.sigmoid(gate)                        # (N, Ci)

        # halo padding inside VMEM scratch (no jnp.pad / HBM round trip)
        pad_ref[...] = jnp.zeros_like(pad_ref)
        pad_ref[pl.ds(pad_off, n_seq), :] = y
        xp = pad_ref[...]                                   # (N + 32, Ci)

        # depthwise conv (31 taps, 'same'), then Swish
        acc = jnp.zeros((n_seq, conf_inner), jnp.float32) + dwb_ref[...]
        base = pad_off - DW_PAD                             # == 1
        for t in range(k_taps):                             # static unrolled taps
            acc = acc + xp[base + t: base + t + n_seq, :] * dww_ref[t:t + 1, :]
        acc = acc * jax.nn.sigmoid(acc)                     # Swish

        # pointwise Conv1d(inner -> dim) + residual, all in-register/VMEM
        out = (jnp.dot(acc, c2w_ref[...], preferred_element_type=jnp.float32)
               + c2b_ref[...])
        o_ref[0] = x + out

    return kernel


def conformer_block(x_bnd, p):
    B, N, D = x_bnd.shape
    K, Ci = p["dw_w"].shape
    kernel = make_conformer_kernel(N, Ci, K)
    return pl.pallas_call(
        kernel,
        out_shape=jax.ShapeDtypeStruct((B, N, D), x_bnd.dtype),
        grid=(B,),
        in_specs=[
            pl.BlockSpec((1, N, D), lambda b: (b, 0, 0)),
            pl.BlockSpec((1, D), lambda b: (0, 0)),
            pl.BlockSpec((1, D), lambda b: (0, 0)),
            pl.BlockSpec((D, 2 * Ci), lambda b: (0, 0)),
            pl.BlockSpec((1, 2 * Ci), lambda b: (0, 0)),
            pl.BlockSpec((K, Ci), lambda b: (0, 0)),
            pl.BlockSpec((1, Ci), lambda b: (0, 0)),
            pl.BlockSpec((Ci, D), lambda b: (0, 0)),
            pl.BlockSpec((1, D), lambda b: (0, 0)),
        ],
        out_specs=pl.BlockSpec((1, N, D), lambda b: (b, 0, 0)),
        scratch_shapes=[pltpu.VMEM((N + 32, Ci), jnp.float32)],
        compiler_params=pltpu.CompilerParams(dimension_semantics=("parallel",)),
    )(x_bnd, p["ln2_g"].reshape(1, D), p["ln2_b"].reshape(1, D),
      p["c1_w"], p["c1_b"].reshape(1, 2 * Ci),
      p["dw_w"], p["dw_b"].reshape(1, Ci),
      p["c2_w"], p["c2_b"].reshape(1, D))


# ----------------------------------------------------------------------------
# Parameter construction (deterministic, synthetic)
# ----------------------------------------------------------------------------

def _ortho_chunk(cols, rng):
    block = rng.standard_normal((cols, cols))
    q, _ = np.linalg.qr(block)
    return q.T


def gaussian_orthogonal_random_matrix(nb_rows, nb_cols, rng):
    nb_full = nb_rows // nb_cols
    blocks = [_ortho_chunk(nb_cols, rng) for _ in range(nb_full)]
    rem = nb_rows - nb_full * nb_cols
    if rem > 0:
        blocks.append(_ortho_chunk(nb_cols, rng)[:rem])
    final = np.concatenate(blocks, axis=0)
    multiplier = np.linalg.norm(rng.standard_normal((nb_rows, nb_cols)), axis=1)
    return (multiplier[:, None] * final).astype(np.float32)


def init_pcmer_params(num_layers, num_heads, dim_model, seed=0):
    rng = np.random.default_rng(seed)
    dim_head = 64                                      # SelfAttention default
    inner = num_heads * dim_head
    nb_features = int(dim_head * math.log(dim_head))   # 266
    m_pad = ((nb_features + 127) // 128) * 128         # 384 (lane aligned)
    conf_inner = dim_model * 2                         # expansion_factor = 2

    def lin(fi, fo):
        return (rng.standard_normal((fi, fo)) * 0.02).astype(np.float32)

    layers = []
    for _ in range(num_layers):
        wq, wk, wv = (lin(dim_model, inner), lin(dim_model, inner),
                      lin(dim_model, inner))
        proj = gaussian_orthogonal_random_matrix(nb_features, dim_head, rng)
        proj_pad = np.zeros((m_pad, dim_head), np.float32)
        proj_pad[:nb_features] = proj
        wa, wg = lin(dim_model, conf_inner), lin(dim_model, conf_inner)
        p = dict(
            heads=num_heads, dim_head=dim_head, nb_features=nb_features,
            ln1_g=np.ones(dim_model, np.float32), ln1_b=np.zeros(dim_model, np.float32),
            wqkv=np.concatenate([wq, wk, wv], axis=1),
            bqkv=np.zeros(3 * inner, np.float32),
            wo=lin(inner, dim_model), bo=np.zeros(dim_model, np.float32),
            proj=proj_pad,
            ln2_g=np.ones(dim_model, np.float32), ln2_b=np.zeros(dim_model, np.float32),
            c1_w=np.concatenate([wa, wg], axis=1),           # [out | gate]
            c1_b=np.zeros(2 * conf_inner, np.float32),
            dw_w=(rng.standard_normal((DW_KERNEL, conf_inner)) * 0.02).astype(np.float32),
            dw_b=np.zeros(conf_inner, np.float32),
            c2_w=lin(conf_inner, dim_model), c2_b=np.zeros(dim_model, np.float32),
        )
        layers.append({k: (v if isinstance(v, int) else jnp.asarray(v))
                       for k, v in p.items()})
    return layers


# ----------------------------------------------------------------------------
# Forward pass
# ----------------------------------------------------------------------------

def encoder_layer_forward(x, p):
    B, N, D = x.shape
    H, Dh = p["heads"], p["dim_head"]

    # ---- self-attention branch: x + Wo(attn(LN1(x))) ----
    qkv = ln_qkv(x.reshape(B * N, D), p["ln1_g"], p["ln1_b"], p["wqkv"], p["bqkv"])
    qkv = qkv.reshape(B, N, 3 * H * Dh)
    x = attention_block(x, qkv, p["proj"], p["wo"], p["bo"], H, Dh, p["nb_features"])
    # TODO(synk): nn.Dropout layers are identity here (inference / p=0.0).

    # ---- conformer conv branch: x + conformer(x) (fully fused) ----
    x = conformer_block(x, p)
    return x


def pcmer_forward(phone, layer_params):
    for p in layer_params:
        phone = encoder_layer_forward(phone, p)
    return phone


# ----------------------------------------------------------------------------
# Main
# ----------------------------------------------------------------------------

if __name__ == "__main__":
    num_layers, num_heads, dim_model = 2, 2, 32
    batch, seq = 2, 8

    params = init_pcmer_params(num_layers, num_heads, dim_model, seed=0)

    key = jax.random.PRNGKey(0)
    phone = jax.random.normal(key, (batch, seq, dim_model), dtype=jnp.float32)

    out = pcmer_forward(phone, params)
    out = jax.block_until_ready(out)
    assert out.shape == (batch, seq, dim_model)
    assert bool(jnp.all(jnp.isfinite(out)))
    print("KERNEL_OK")
</pallas_src>

<mosaic_0001>
module attributes {stable_mosaic.version = 11 : i64} {
  func.func @ln_qkv_kernel(%arg0: i32, %arg1: memref<16x32xf32, #tpu.memory_space<vmem>>, %arg2: memref<1x32xf32, #tpu.memory_space<vmem>>, %arg3: memref<1x32xf32, #tpu.memory_space<vmem>>, %arg4: memref<32x384xf32, #tpu.memory_space<vmem>>, %arg5: memref<1x384xf32, #tpu.memory_space<vmem>>, %arg6: memref<16x384xf32, #tpu.memory_space<vmem>>) attributes {dimension_semantics = [#tpu.dimension_semantics<parallel>], iteration_bounds = array<i64: 1>, scalar_prefetch = 0 : i64, scratch_operands = 0 : i64, tpu.core_type = #tpu.core_type<tc>, window_params = [{transform_indices = @transform_0, window_bounds = array<i64: 16, 32>}, {pipeline_mode = #tpu.pipeline_mode<synchronous>, transform_indices = @transform_1, window_bounds = array<i64: 1, 32>}, {pipeline_mode = #tpu.pipeline_mode<synchronous>, transform_indices = @transform_2, window_bounds = array<i64: 1, 32>}, {pipeline_mode = #tpu.pipeline_mode<synchronous>, transform_indices = @transform_3, window_bounds = array<i64: 32, 384>}, {pipeline_mode = #tpu.pipeline_mode<synchronous>, transform_indices = @transform_4, window_bounds = array<i64: 1, 384>}, {transform_indices = @transform_5, window_bounds = array<i64: 16, 384>}]} {
    %c0 = arith.constant 0 : index
    %c0_0 = arith.constant 0 : index
    %0 = vector.load %arg1[%c0, %c0_0] : memref<16x32xf32, #tpu.memory_space<vmem>>, vector<16x32xf32>
    %c0_1 = arith.constant 0 : index
    %c0_2 = arith.constant 0 : index
    %1 = vector.load %arg2[%c0_1, %c0_2] : memref<1x32xf32, #tpu.memory_space<vmem>>, vector<1x32xf32>
    %c0_3 = arith.constant 0 : index
    %c0_4 = arith.constant 0 : index
    %2 = vector.load %arg3[%c0_3, %c0_4] : memref<1x32xf32, #tpu.memory_space<vmem>>, vector<1x32xf32>
    %cst = arith.constant dense<0.000000e+00> : vector<16xf32>
    %3 = vector.multi_reduction <add>, %0, %cst [1] : vector<16x32xf32> to vector<16xf32>
    %4 = vector.shape_cast %3 : vector<16xf32> to vector<16x1xf32>
    %cst_5 = arith.constant 3.200000e+01 : f32
    %5 = vector.broadcast %cst_5 : f32 to vector<16x1xf32>
    %6 = arith.divf %4, %5 : vector<16x1xf32>
    %7 = vector.broadcast %6 : vector<16x1xf32> to vector<16x32xf32>
    %8 = arith.subf %0, %7 : vector<16x32xf32>
    %9 = arith.mulf %8, %8 : vector<16x32xf32>
    %cst_6 = arith.constant dense<0.000000e+00> : vector<16xf32>
    %10 = vector.multi_reduction <add>, %9, %cst_6 [1] : vector<16x32xf32> to vector<16xf32>
    %11 = vector.shape_cast %10 : vector<16xf32> to vector<16x1xf32>
    %cst_7 = arith.constant 3.200000e+01 : f32
    %12 = vector.broadcast %cst_7 : f32 to vector<16x1xf32>
    %13 = arith.divf %11, %12 : vector<16x1xf32>
    %cst_8 = arith.constant 9.99999974E-6 : f32
    %14 = vector.broadcast %cst_8 : f32 to vector<16x1xf32>
    %15 = arith.addf %13, %14 : vector<16x1xf32>
    %16 = math.rsqrt %15 : vector<16x1xf32>
    %17 = vector.broadcast %16 : vector<16x1xf32> to vector<16x32xf32>
    %18 = arith.mulf %8, %17 : vector<16x32xf32>
    %19 = vector.broadcast %1 : vector<1x32xf32> to vector<16x32xf32>
    %20 = arith.mulf %18, %19 : vector<16x32xf32>
    %21 = vector.broadcast %2 : vector<1x32xf32> to vector<16x32xf32>
    %22 = arith.addf %20, %21 : vector<16x32xf32>
    %c0_9 = arith.constant 0 : index
    %c0_10 = arith.constant 0 : index
    %23 = vector.load %arg4[%c0_9, %c0_10] : memref<32x384xf32, #tpu.memory_space<vmem>>, vector<32x384xf32>
    %cst_11 = arith.constant dense<0.000000e+00> : vector<16x384xf32>
    %24 = tpu.matmul %22, %23, %cst_11 {dimension_numbers = #tpu.dot_dimension_numbers<[1], [0], [0], [1], [0, 0, 1, 1], [], []>} : vector<16x32xf32>, vector<32x384xf32>, vector<16x384xf32> -> vector<16x384xf32>
    %c0_12 = arith.constant 0 : index
    %c0_13 = arith.constant 0 : index
    %25 = vector.load %arg5[%c0_12, %c0_13] : memref<1x384xf32, #tpu.memory_space<vmem>>, vector<1x384xf32>
    %26 = vector.broadcast %25 : vector<1x384xf32> to vector<16x384xf32>
    %27 = arith.addf %24, %26 : vector<16x384xf32>
    %c0_14 = arith.constant 0 : index
    %c0_15 = arith.constant 0 : index
    %28 = vector.load %arg6[%c0_14, %c0_15] : memref<16x384xf32, #tpu.memory_space<vmem>>, vector<16x384xf32>
    tpu.vector_store %arg6[%c0_14, %c0_15], %27 {strides = array<i32>} : memref<16x384xf32, #tpu.memory_space<vmem>>, vector<16x384xf32>,
    return
  }
  func.func @transform_0(%arg0: i32) -> (i32, i32) {
    %c0_i32 = arith.constant 0 : i32
    %c0_i32_0 = arith.constant 0 : i32
    return %arg0, %c0_i32 : i32, i32
  }
  func.func @transform_1(%arg0: i32) -> (i32, i32) {
    %c0_i32 = arith.constant 0 : i32
    %c0_i32_0 = arith.constant 0 : i32
    %c0_i32_1 = arith.constant 0 : i32
    return %c0_i32, %c0_i32_0 : i32, i32
  }
  func.func @transform_2(%arg0: i32) -> (i32, i32) {
    %c0_i32 = arith.constant 0 : i32
    %c0_i32_0 = arith.constant 0 : i32
    %c0_i32_1 = arith.constant 0 : i32
    return %c0_i32, %c0_i32_0 : i32, i32
  }
  func.func @transform_3(%arg0: i32) -> (i32, i32) {
    %c0_i32 = arith.constant 0 : i32
    %c0_i32_0 = arith.constant 0 : i32
    %c0_i32_1 = arith.constant 0 : i32
    return %c0_i32, %c0_i32_0 : i32, i32
  }
  func.func @transform_4(%arg0: i32) -> (i32, i32) {
    %c0_i32 = arith.constant 0 : i32
    %c0_i32_0 = arith.constant 0 : i32
    %c0_i32_1 = arith.constant 0 : i32
    return %c0_i32, %c0_i32_0 : i32, i32
  }
  func.func @transform_5(%arg0: i32) -> (i32, i32) {
    %c0_i32 = arith.constant 0 : i32
    %c0_i32_0 = arith.constant 0 : i32
    return %arg0, %c0_i32 : i32, i32
  }
}

</mosaic_0001>

<bundles_post_ra>
// kernel: tpu_custom_call.1
= control target key start
LH: loop header
LB: loop body
LE: loop exit
PB: predicated region body
PF: predicated region fallthrough
CT: control target
= control target key end

     0   :  { %10 = vsyncpa [#allocation3], 0  ;;  %s503_s0 = inlined_call_operand.hbm [shape: f32[16,32], index: 0, kind: input, shape index: {}]   ;;  %s504_s1 = inlined_call_operand.hbm [shape: f32[1,32], index: 1, kind: input, shape index: {}]   ;;  %s505_s2 = inlined_call_operand.hbm [shape: f32[1,32], index: 2, kind: input, shape index: {}]   ;;  %s506_s3 = inlined_call_operand.hbm [shape: f32[32,384], index: 3, kind: input, shape index: {}]   ;;  %s507_s4 = inlined_call_operand.vmem [shape: f32[1,384], index: 4, kind: input, shape index: {}]   ;;  %s508_s5 = inlined_call_operand.hbm [shape: f32[16,384], index: 5, kind: output, shape index: {}]  }
   0x1   :  { %11 = vsyncpa [#allocation6], 0 }
   0x2   :  { %12 = vsyncpa [#allocation9], 0  ;;  %s32_s20 = sshll.u32 %s504_s1, 4  ;;  %s33_s20 = int_to_ptr.hbm [resolvable:$true] %s32_s20 }
   0x3   :  { %13 = vsyncpa [#allocation4], 0  ;;  %s424_s21 = smov [#allocation5]   ;;  %s18_s25 = sshll.u32 %s503_s0, 4  ;;  %s19_s25 = int_to_ptr.hbm [resolvable:$true] %s18_s25 }
   0x4   :  { %s34_s22 = sshll.u32 %s424_s21, 4  ;;  %s425_s26 = smov [#allocation2]   ;;  %s35_s22 = int_to_ptr.vmem [resolvable:$true] %s34_s22 }
   0x5   :  { %37 = dma.hbm_to_vmem [thread:$0]  %s33_s20, 16, %s35_s22, [#allocation6]  }
   0x6   :  { %s20_s27 = sshll.u32 %s425_s26, 4  ;;  %s426_s28 = smov 128   ;;  %s21_s27 = int_to_ptr.vmem [resolvable:$true] %s20_s27 }
   0x7   :  { %s427_s29 = smov 8   ;;  %s43_s1 = sshll.u32 %s505_s2, 4  ;;  %s44_s1 = int_to_ptr.hbm [resolvable:$true] %s43_s1 }
   0x8   :  { %26 = dma.hbm_to_vmem [thread:$0]  %s19_s25, 256, %s21_s27, [#allocation3], %s426_s28, %s426_s28, %s427_s29  }
   0x9   :  { %s428_s7 = smov [#allocation7]   ;;  %s53_s0 = sshll.u32 %s506_s3, 4  ;;  %s54_s0 = int_to_ptr.hbm [resolvable:$true] %s53_s0 }
   0xa   :  { %s45_s8 = sshll.u32 %s428_s7, 4  ;;  %s429_s11 = smov [#allocation8]   ;;  %s46_s8 = int_to_ptr.vmem [resolvable:$true] %s45_s8 }
   0xb   :  { %48 = dma.hbm_to_vmem [thread:$0]  %s44_s1, 16, %s46_s8, [#allocation6]  }
   0xc   :  { %s55_s12 = sshll.u32 %s429_s11, 4  ;;  %s430_s13 = smov 384   ;;  %s56_s12 = int_to_ptr.vmem [resolvable:$true] %s55_s12 }
   0xd   :  { %s431_s14 = smov 24  }
   0xe   :  { %61 = dma.hbm_to_vmem [thread:$0]  %s54_s0, 1536, %s56_s12, [#allocation9], %s430_s13, %s430_s13, %s431_s14  }
   0xf   :  { %416 = dma.done.wait [#allocation3], 256  }
  0x10   :  { %417 = vsyncadd [#allocation3], 4294967040 }
  0x11   :  { %418 = dma.done.wait [#allocation6], 32  }
  0x12   :  { %419 = vsyncadd [#allocation6], 4294967264 }
  0x13   :  { %420 = dma.done.wait [#allocation9], 1536  }
  0x14   :  { %421 = vsyncadd [#allocation9], 4294965760  ;;  %vm84_vm0 = vcmask 261120   ;;  %v80_v0 = vld [vmem:[#allocation2] sm:$0xff]  ;;  %v81_v2 = vld [vmem:[#allocation2 + $0x8] sm:$0xff]  ;;  %v432_v4 = vmov 32.0  }
  0x15   :  { %v85_v1 = vsel %vm84_vm0, %v80_v0, 0.0  ;;  %v88_v3 = vsel %vm84_vm0, %v81_v2, 0.0  ;;  %290 = vrcp.f32 %v432_v4  ;;  %v155_v21 = vld [vmem:[#allocation8 + $0x48] sm:$0xff]  ;;  %v156_v22 = vld [vmem:[#allocation8 + $0x50] sm:$0xff]  ;;  %v157_v23 = vld [vmem:[#allocation8 + $0x58] sm:$0xff]  ;;  %s433_s15 = smov [#allocation10]  }
  0x16   :  { %86 = vadd.xlane.f32.xlu0 %v85_v1  ;;  %184 = vmatpush.msra.mxu0 %v155_v21  ;;  %v152_v24 = vld [vmem:[#allocation8 + $0x30] sm:$0xff]  ;;  %v153_v25 = vld [vmem:[#allocation8 + $0x38] sm:$0xff]  ;;  %v154_v26 = vld [vmem:[#allocation8 + $0x40] sm:$0xff]  ;;  %s251_s16 = sshll.u32 %s433_s15, 4  ;;  %s252_s16 = int_to_ptr.vmem [resolvable:$true] %s251_s16 }
  0x17   :  { %207 = vmatpush.msra.mxu1 %v156_v22  ;;  %230 = vmatpush.msra.mxu2 %v157_v23  ;;  %v149_v27 = vld [vmem:[#allocation8 + $0x18] sm:$0xff]  ;;  %v150_v28 = vld [vmem:[#allocation8 + $0x20] sm:$0xff]  ;;  %v151_v29 = vld [vmem:[#allocation8 + $0x28] sm:$0xff] }
  0x18   :  { %274 = vmatpush.msra.mxu3 %v155_v21  ;;  %185 = vmatpush.msra.mxu0 %v152_v24  ;;  %v146_v30 = vld [vmem:[#allocation8] sm:$0xff]  ;;  %v147_v31 = vld [vmem:[#allocation8 + $0x8] sm:$0xff]  ;;  %v148_v32 = vld [vmem:[#allocation8 + $0x10] sm:$0xff] }
  0x19   :  { %208 = vmatpush.msra.mxu1 %v153_v25  ;;  %231 = vmatpush.msra.mxu2 %v154_v26  ;;  %v288_v47 = vld [vmem:[#allocation5] ss:$0 sm:$0xff]  ;;  %v289_v51 = vld [vmem:[#allocation7] ss:$0 sm:$0xff]  ;;  %v158_v61 = vld [vmem:[%s507_s4] sm:$0x7] }
  0x1a   :  { %275 = vmatpush.msra.mxu3 %v152_v24  ;;  %186 = vmatpush.msra.mxu0 %v149_v27  ;;  %v160_v62 = vperm.slane %v158_v61, 0  ;;  %v161_v63 = vperm.slane %v158_v61, 1  ;;  %v162_v4 = vperm.slane %v158_v61, 2  ;;  %s253_s4 = sshll.u32 %s508_s5, 4  ;;  %s254_s4 = int_to_ptr.hbm [resolvable:$true] %s253_s4 }
  0x1b   :  { %v291_v5 = vpop.eup %290  ;;  %209 = vmatpush.msra.mxu1 %v150_v28  ;;  %232 = vmatpush.msra.mxu2 %v151_v29 }
  0x1c   :  { %v92_v6 = vmul.f32 32.0, %v291_v5  ;;  %vm96_vm1 = vweird.f32 %v291_v5  ;;  %276 = vmatpush.msra.mxu3 %v149_v27  ;;  %187 = vmatpush.msra.mxu0 %v146_v30 }
  0x1d   :  { %210 = vmatpush.msra.mxu1 %v147_v31  ;;  %233 = vmatpush.msra.mxu2 %v148_v32 }
  0x1e   :  { %89 = vadd.xlane.f32.xlu0 %v88_v3  ;;  %v93_v7 = vsub.f32 1.0, %v92_v6  ;;  %277 = vmatpush.msra.mxu3 %v146_v30 }
  0x20   :  { %v94_v8 = vmul.f32 %v291_v5, %v93_v7 }
  0x22   :  { %v95_v9 = vadd.f32 %v291_v5, %v94_v8 }
  0x24   :  { %v97_v10 = vsel %vm96_vm1, %v291_v5, %v95_v9 }
  0x89   :  { %v87_v11 = vpop.xlane.xlu0 %86 }
  0x8a   :  { %v98_v12 = vmul.f32 %v97_v10, %v87_v11 }
  0x8c   :  { %v100_v13 = vsub.f32 %v80_v0, %v98_v12 }
  0x8e   :  { %v102_v14 = vmul.f32 %v100_v13, %v100_v13 }
  0x90   :  { %v104_v15 = vsel %vm84_vm0, %v102_v14, 0.0 }
  0x91   :  { %105 = vadd.xlane.f32.xlu1 %v104_v15  ;;  %v90_v16 = vpop.xlane.xlu0 %89 }
  0x92   :  { %v99_v17 = vmul.f32 %v97_v10, %v90_v16 }
  0x94   :  { %v482_v18 = vsub.f32 %v81_v2, %v99_v17 }
  0x96   :  { %v103_v19 = vmul.f32 %v482_v18, %v482_v18 }
  0x98   :  { %v107_v20 = vsel %vm84_vm0, %v103_v19, 0.0 }
  0x99   :  { %108 = vadd.xlane.f32.xlu1 %v107_v20 }
 0x104   :  { %v106_v33 = vpop.xlane.xlu1 %105 }
 0x105   :  { %v110_v34 = vmul.f32 %v106_v33, %v97_v10 }
 0x107   :  { %v112_v35 = vadd.f32 1e-05, %v110_v34 }
 0x109   :  { %292 = vrsqrt.f32 %v112_v35  ;;  %vm120_vm3 = vweird.f32 %v112_v35 }
 0x10c   :  { %v109_v36 = vpop.xlane.xlu1 %108 }
 0x10d   :  { %v111_v37 = vmul.f32 %v109_v36, %v97_v10 }
 0x10f   :  { %v293_v38 = vpop.eup %292  ;;  %v113_v39 = vadd.f32 1e-05, %v111_v37 }
 0x110   :  { %v115_v40 = vmul.f32 %v293_v38, %v112_v35  ;;  %vm121_vm2 = vweird.f32 %v293_v38 }
 0x111   :  { %294 = vrsqrt.f32 %v113_v39  ;;  %vm122_vm4 = vmor %vm120_vm3, %vm121_vm2  ;;  %vm130_vm6 = vweird.f32 %v113_v39 }
 0x112   :  { %v116_v41 = vmul.f32 %v293_v38, %v115_v40 }
 0x114   :  { %v117_v42 = vmul.f32 0.5, %v116_v41 }
 0x116   :  { %v118_v43 = vsub.f32 1.5, %v117_v42 }
 0x117   :  { %v295_v44 = vpop.eup %294 }
 0x118   :  { %v119_v45 = vmul.f32 %v293_v38, %v118_v43  ;;  %v125_v46 = vmul.f32 %v295_v44, %v113_v39  ;;  %vm131_vm5 = vweird.f32 %v295_v44 }
 0x119   :  { %vm132_vm7 = vmor %vm130_vm6, %vm131_vm5 }
 0x11a   :  { %v123_v48 = vsel %vm122_vm4, %v293_v38, %v119_v45  ;;  %v126_v49 = vmul.f32 %v295_v44, %v125_v46 }
 0x11b   :  { %v134_v50 = vmul.f32 %v123_v48, %v100_v13 }
 0x11c   :  { %v127_v52 = vmul.f32 0.5, %v126_v49 }
 0x11d   :  { %v139_v53 = vmul.f32 %v288_v47, %v134_v50 }
 0x11e   :  { %v128_v54 = vsub.f32 1.5, %v127_v52 }
 0x11f   :  { %v144_v55 = vadd.f32 %v289_v51, %v139_v53 }
 0x120   :  { %v129_v56 = vmul.f32 %v295_v44, %v128_v54 }
 0x121   :  { %268 = vmatmul.msk.f32.vlgmr.msra.gmra.mxu0 %vm84_vm0, %v144_v55  ;;  %270 = vmatmul.msk.f32.vlgmr.msra.gmra.mxu1 %vm84_vm0, %v144_v55 }
 0x122   :  { %v133_v57 = vsel %vm132_vm7, %v295_v44, %v129_v56  ;;  %272 = vmatmul.msk.f32.vlgmr.msra.gmra.mxu2 %vm84_vm0, %v144_v55 }
 0x123   :  { %v135_v58 = vmul.f32 %v133_v57, %v482_v18 }
 0x125   :  { %v140_v59 = vmul.f32 %v288_v47, %v135_v58 }
 0x127   :  { %v145_v60 = vadd.f32 %v289_v51, %v140_v59 }
 0x129   :  { %269 = vmatmul.msk.f32.vlgmr.msra.gmra.mxu3 %vm84_vm0, %v145_v60  ;;  %271 = vmatmul.msk.f32.gmra.mxu1 %vm84_vm0, %v145_v60 }
 0x12a   :  { %273 = vmatmul.msk.f32.gmra.mxu2 %vm84_vm0, %v145_v60 }
 0x19e   :  { %v189_v0 = vpop.f32.mrf.mxu0  ;;  %v212_v1 = vpop.f32.mrf.mxu1 }
 0x19f   :  { %v190_v2 = vadd.f32 %v189_v0, %v160_v62  ;;  %v213_v3 = vadd.f32 %v212_v1, %v161_v63 }
 0x1a1   :  { %241 = vst [vmem:[#allocation10] sm:$0xff] %v190_v2 }
 0x1a2   :  { %242 = vst [vmem:[#allocation10 + $0x8] sm:$0xff] %v213_v3 }
 0x1a5   :  { %v235_v5 = vpop.f32.mrf.mxu2 }
 0x1a6   :  { %v236_v6 = vadd.f32 %v235_v5, %v162_v4  ;;  %v215_v7 = vpop.f32.mrf.mxu1 }
 0x1a7   :  { %v216_v8 = vadd.f32 %v215_v7, %v161_v63 }
 0x1a8   :  { %243 = vst [vmem:[#allocation10 + $0x10] sm:$0xff] %v236_v6 }
 0x1a9   :  { %245 = vst [vmem:[#allocation10 + $0x20] sm:$0xff] %v216_v8 }
 0x1ac   :  { %v192_v9 = vpop.f32.mrf.mxu3 }
 0x1ad   :  { %v193_v10 = vadd.f32 %v192_v9, %v160_v62  ;;  %v238_v11 = vpop.f32.mrf.mxu2 }
 0x1ae   :  { %v239_v12 = vadd.f32 %v238_v11, %v162_v4 }
 0x1af   :  { %244 = vst [vmem:[#allocation10 + $0x18] sm:$0xff] %v193_v10 }
 0x1b0   :  { %246 = vst [vmem:[#allocation10 + $0x28] sm:$0xff] %v239_v12 }
 0x1b1   :  { %259 = dma.vmem_to_hbm [thread:$0]  %s252_s16, 768, %s254_s4, [#allocation4], %s430_s13, %s430_s13, %s431_s14  }
 0x1b2   :  { %422 = dma.done.wait [#allocation4], 768  }
 0x1b3   :  { %423 = vsyncadd [#allocation4], 4294966528 }
 0x1b4   :  { %264 = vsyncpa [#allocation3], 1 }
 0x1b5   :  { %265 = vsyncpa [#allocation6], 1 }
 0x1b6   :  { %266 = vsyncpa [#allocation9], 1 }
 0x1b7   :  { %267 = vsyncpa [#allocation4], 1 }

</bundles_post_ra>
